<compile_context>
chip_gen: v5e
topology: v5e:2x2
jax: 0.10.0
libtpu: 0.0.40
codegen_flags: <defaults>
</compile_context>

<pallas_src>
import functools

import jax
import jax.numpy as jnp
from jax import lax
from jax.experimental import pallas as pl
from jax.experimental.pallas import tpu as pltpu  # noqa: F401  (kept for TPU-specific params)

BN_MOMENTUM = 0.1   # only affects running-stat updates, not the forward output
BN_EPS = 1e-5


def _conv_bn_kernel(x_ref, w_ref, mask_ref, g_ref, b_ref, o_ref,
                    *, kH, kW, Wp, NP, count, eps):
    """Fused Conv2d(no bias, stride 1) + BatchNorm2d(training) forward.

    x_ref   : (Cin_pad, XLEN)        padded input, channel-major, spatial flattened on lanes.
                                     Column layout: n*Hp*Wp + h*Wp + w, zero tail after NP.
    w_ref   : (kH*kW, Cout, Cin_pad) per-tap weight matrices, tap index t = kh*kW + kw.
    mask_ref: (1, NP)                1.0 at valid output positions (oh<OH, ow<OW), else 0.0.
    g_ref   : (Cout, 1)              BN gamma.
    b_ref   : (Cout, 1)              BN beta.
    o_ref   : (Cout, NP)             output, channel-major over flattened padded spatial.
    """
    Cout = w_ref.shape[1]

    # ---- conv as 9-tap shift-and-accumulate (static unroll; stride == 1) ----------------
    # Output column j = n*Hp*Wp + oh*Wp + ow needs input column j + kh*Wp + kw, so each tap
    # is a static lane-offset slice of the flattened input -- no im2col slab, no pad slab.
    acc = jnp.zeros((Cout, NP), jnp.float32)
    for kh in range(kH):
        for kw in range(kW):
            t = kh * kW + kw
            d = kh * Wp + kw
            xs = x_ref[:, d:d + NP]                               # (Cin_pad, NP)
            acc = acc + jnp.dot(w_ref[t], xs,
                                preferred_element_type=jnp.float32)  # (Cout, NP)

    # ---- BatchNorm2d training-mode statistics (masked, two-pass for stability) ----------
    m = mask_ref[...]                                             # (1, NP)
    inv_count = 1.0 / count
    mean = jnp.sum(acc * m, axis=1, keepdims=True) * inv_count    # (Cout, 1)
    cen = (acc - mean) * m
    var = jnp.sum(cen * cen, axis=1, keepdims=True) * inv_count   # biased variance
    scale = g_ref[...] * lax.rsqrt(var + eps)                     # (Cout, 1)
    shift = b_ref[...] - mean * scale                             # (Cout, 1)

    # ---- single lane-dense store; garbage columns are sliced away in the wrapper --------
    o_ref[...] = acc * scale + shift


def conv_batchnorm(x_nchw, w_oihw, gamma, beta, *, stride=1, padding=None, eps=BN_EPS):
    """Forward of ConvBatchNorm. Takes/returns NCHW to match PyTorch semantics."""
    Cout, Cin, kH, kW = w_oihw.shape
    padding = padding if padding is not None else int(kH / 2)
    assert stride == 1  # TODO(synk): stride > 1 not implemented in the shift-and-accumulate
    N, Cin_x, H, W = x_nchw.shape
    assert Cin_x == Cin
    Hp, Wp = H + 2 * padding, W + 2 * padding
    OH, OW = Hp - kH + 1, Wp - kW + 1
    P = Hp * Wp
    NP = N * P
    tail = (kH - 1) * Wp + (kW - 1)                     # max shift read past column NP
    XLEN = ((NP + tail + 127) // 128) * 128             # lane-aligned input width
    Cin_p = ((Cin + 7) // 8) * 8                        # sublane-aligned contraction dim

    # Channel-major, padded, spatial flattened onto lanes, zero tail for the tap shifts.
    x = jnp.pad(x_nchw.astype(jnp.float32),
                ((0, 0), (0, Cin_p - Cin), (padding, padding), (padding, padding)))
    x = jnp.transpose(x, (1, 0, 2, 3)).reshape(Cin_p, NP)
    x = jnp.pad(x, ((0, 0), (0, XLEN - NP)))

    # OIHW -> (kH*kW, Cout, Cin_p): tap-major per-tap weight matrices.
    w_taps = jnp.pad(w_oihw.astype(jnp.float32), ((0, 0), (0, Cin_p - Cin), (0, 0), (0, 0)))
    w_taps = jnp.transpose(w_taps, (2, 3, 0, 1)).reshape(kH * kW, Cout, Cin_p)

    # Valid-output mask over the flattened padded spatial grid (precomputed; no in-kernel mod).
    mask = jnp.pad(jnp.ones((N, OH, OW), jnp.float32),
                   ((0, 0), (0, Hp - OH), (0, Wp - OW))).reshape(1, NP)

    g = gamma.reshape(Cout, 1).astype(jnp.float32)
    b = beta.reshape(Cout, 1).astype(jnp.float32)

    kernel = functools.partial(_conv_bn_kernel, kH=kH, kW=kW, Wp=Wp, NP=NP,
                               count=float(N * OH * OW), eps=eps)
    # No grid: the whole problem (<100 KiB) stays resident in VMEM.
    # TODO(synk): for large N/H*W add a grid over N (marked "parallel" for v7x's 2 TCs) with
    # BN partial sums accumulated via pl.when init/finalize instead of the resident design.
    out_flat = pl.pallas_call(
        kernel,
        out_shape=jax.ShapeDtypeStruct((Cout, NP), jnp.float32),
    )(x, w_taps, mask, g, b)

    # TODO(synk): BN running_mean/running_var momentum update (stateful) is not reproduced;
    # it does not affect the forward output.
    out = out_flat.reshape(Cout, N, Hp, Wp)[:, :, :OH, :OW]   # drop padded/garbage positions
    return jnp.transpose(out, (1, 0, 2, 3))                    # (N, Cout, OH, OW)


if __name__ == "__main__":
    # Module config: ConvBatchNorm(nIn=4, nOut=8, kSize=3) -> stride=1, padding=1
    N, Cin, H, W = 2, 4, 16, 16
    Cout, kSize = 8, 3
    pad = kSize // 2

    key = jax.random.PRNGKey(0)
    kx, kw, kg, kb = jax.random.split(key, 4)
    x = jax.random.normal(kx, (N, Cin, H, W), jnp.float32)                   # NCHW (PyTorch)
    w = jax.random.normal(kw, (Cout, Cin, kSize, kSize), jnp.float32) * 0.1  # OIHW (PyTorch)
    gamma = 1.0 + 0.1 * jax.random.normal(kg, (Cout,), jnp.float32)
    beta = 0.1 * jax.random.normal(kb, (Cout,), jnp.float32)

    out = conv_batchnorm(x, w, gamma, beta, stride=1, padding=None)
    out = jax.block_until_ready(out)

    # Reference: XLA f32 conv followed by training-mode BatchNorm with batch statistics.
    ref_conv = lax.conv_general_dilated(
        x, w, window_strides=(1, 1), padding=[(pad, pad), (pad, pad)],
        dimension_numbers=("NCHW", "OIHW", "NCHW"))
    mean = ref_conv.mean(axis=(0, 2, 3), keepdims=True)
    var = ref_conv.var(axis=(0, 2, 3), keepdims=True)
    ref = ((ref_conv - mean) * lax.rsqrt(var + BN_EPS)
           * gamma.reshape(1, Cout, 1, 1) + beta.reshape(1, Cout, 1, 1))

    assert out.shape == (N, Cout, H, W), out.shape
    max_err = float(jnp.max(jnp.abs(out - ref)))
    assert jnp.allclose(out, ref, rtol=1e-3, atol=1e-3), max_err
    print("KERNEL_OK")
</pallas_src>

<mosaic_0001>
module attributes {stable_mosaic.version = 11 : i64} {
  func.func @_conv_bn_kernel(%arg0: memref<8x768xf32, #tpu.memory_space<vmem>>, %arg1: memref<9x8x8xf32, #tpu.memory_space<vmem>>, %arg2: memref<1x648xf32, #tpu.memory_space<vmem>>, %arg3: memref<8x1xf32, #tpu.memory_space<vmem>>, %arg4: memref<8x1xf32, #tpu.memory_space<vmem>>, %arg5: memref<8x648xf32, #tpu.memory_space<vmem>>) attributes {dimension_semantics = [], scalar_prefetch = 0 : i64, scratch_operands = 0 : i64, tpu.core_type = #tpu.core_type<tc>} {
    %cst = arith.constant 0.000000e+00 : f32
    %0 = vector.broadcast %cst : f32 to vector<8x648xf32>
    %c0 = arith.constant 0 : index
    %c0_0 = arith.constant 0 : index
    %1 = vector.load %arg0[%c0, %c0_0] : memref<8x768xf32, #tpu.memory_space<vmem>>, vector<8x648xf32>
    %c0_1 = arith.constant 0 : index
    %c0_2 = arith.constant 0 : index
    %c0_3 = arith.constant 0 : index
    %2 = vector.load %arg1[%c0_1, %c0_2, %c0_3] : memref<9x8x8xf32, #tpu.memory_space<vmem>>, vector<1x8x8xf32>
    %3 = vector.shape_cast %2 : vector<1x8x8xf32> to vector<8x8xf32>
    %cst_4 = arith.constant dense<0.000000e+00> : vector<8x648xf32>
    %4 = tpu.matmul %3, %1, %cst_4 {dimension_numbers = #tpu.dot_dimension_numbers<[1], [0], [0], [1], [0, 0, 1, 1], [], []>} : vector<8x8xf32>, vector<8x648xf32>, vector<8x648xf32> -> vector<8x648xf32>
    %5 = arith.addf %0, %4 : vector<8x648xf32>
    %c0_5 = arith.constant 0 : index
    %c1 = arith.constant 1 : index
    %6 = vector.load %arg0[%c0_5, %c1] : memref<8x768xf32, #tpu.memory_space<vmem>>, vector<8x648xf32>
    %c1_6 = arith.constant 1 : index
    %c0_7 = arith.constant 0 : index
    %c0_8 = arith.constant 0 : index
    %7 = vector.load %arg1[%c1_6, %c0_7, %c0_8] : memref<9x8x8xf32, #tpu.memory_space<vmem>>, vector<1x8x8xf32>
    %8 = vector.shape_cast %7 : vector<1x8x8xf32> to vector<8x8xf32>
    %cst_9 = arith.constant dense<0.000000e+00> : vector<8x648xf32>
    %9 = tpu.matmul %8, %6, %cst_9 {dimension_numbers = #tpu.dot_dimension_numbers<[1], [0], [0], [1], [0, 0, 1, 1], [], []>} : vector<8x8xf32>, vector<8x648xf32>, vector<8x648xf32> -> vector<8x648xf32>
    %10 = arith.addf %5, %9 : vector<8x648xf32>
    %c0_10 = arith.constant 0 : index
    %c2 = arith.constant 2 : index
    %11 = vector.load %arg0[%c0_10, %c2] : memref<8x768xf32, #tpu.memory_space<vmem>>, vector<8x648xf32>
    %c2_11 = arith.constant 2 : index
    %c0_12 = arith.constant 0 : index
    %c0_13 = arith.constant 0 : index
    %12 = vector.load %arg1[%c2_11, %c0_12, %c0_13] : memref<9x8x8xf32, #tpu.memory_space<vmem>>, vector<1x8x8xf32>
    %13 = vector.shape_cast %12 : vector<1x8x8xf32> to vector<8x8xf32>
    %cst_14 = arith.constant dense<0.000000e+00> : vector<8x648xf32>
    %14 = tpu.matmul %13, %11, %cst_14 {dimension_numbers = #tpu.dot_dimension_numbers<[1], [0], [0], [1], [0, 0, 1, 1], [], []>} : vector<8x8xf32>, vector<8x648xf32>, vector<8x648xf32> -> vector<8x648xf32>
    %15 = arith.addf %10, %14 : vector<8x648xf32>
    %c0_15 = arith.constant 0 : index
    %c18 = arith.constant 18 : index
    %16 = vector.load %arg0[%c0_15, %c18] : memref<8x768xf32, #tpu.memory_space<vmem>>, vector<8x648xf32>
    %c3 = arith.constant 3 : index
    %c0_16 = arith.constant 0 : index
    %c0_17 = arith.constant 0 : index
    %17 = vector.load %arg1[%c3, %c0_16, %c0_17] : memref<9x8x8xf32, #tpu.memory_space<vmem>>, vector<1x8x8xf32>
    %18 = vector.shape_cast %17 : vector<1x8x8xf32> to vector<8x8xf32>
    %cst_18 = arith.constant dense<0.000000e+00> : vector<8x648xf32>
    %19 = tpu.matmul %18, %16, %cst_18 {dimension_numbers = #tpu.dot_dimension_numbers<[1], [0], [0], [1], [0, 0, 1, 1], [], []>} : vector<8x8xf32>, vector<8x648xf32>, vector<8x648xf32> -> vector<8x648xf32>
    %20 = arith.addf %15, %19 : vector<8x648xf32>
    %c0_19 = arith.constant 0 : index
    %c19 = arith.constant 19 : index
    %21 = vector.load %arg0[%c0_19, %c19] : memref<8x768xf32, #tpu.memory_space<vmem>>, vector<8x648xf32>
    %c4 = arith.constant 4 : index
    %c0_20 = arith.constant 0 : index
    %c0_21 = arith.constant 0 : index
    %22 = vector.load %arg1[%c4, %c0_20, %c0_21] : memref<9x8x8xf32, #tpu.memory_space<vmem>>, vector<1x8x8xf32>
    %23 = vector.shape_cast %22 : vector<1x8x8xf32> to vector<8x8xf32>
    %cst_22 = arith.constant dense<0.000000e+00> : vector<8x648xf32>
    %24 = tpu.matmul %23, %21, %cst_22 {dimension_numbers = #tpu.dot_dimension_numbers<[1], [0], [0], [1], [0, 0, 1, 1], [], []>} : vector<8x8xf32>, vector<8x648xf32>, vector<8x648xf32> -> vector<8x648xf32>
    %25 = arith.addf %20, %24 : vector<8x648xf32>
    %c0_23 = arith.constant 0 : index
    %c20 = arith.constant 20 : index
    %26 = vector.load %arg0[%c0_23, %c20] : memref<8x768xf32, #tpu.memory_space<vmem>>, vector<8x648xf32>
    %c5 = arith.constant 5 : index
    %c0_24 = arith.constant 0 : index
    %c0_25 = arith.constant 0 : index
    %27 = vector.load %arg1[%c5, %c0_24, %c0_25] : memref<9x8x8xf32, #tpu.memory_space<vmem>>, vector<1x8x8xf32>
    %28 = vector.shape_cast %27 : vector<1x8x8xf32> to vector<8x8xf32>
    %cst_26 = arith.constant dense<0.000000e+00> : vector<8x648xf32>
    %29 = tpu.matmul %28, %26, %cst_26 {dimension_numbers = #tpu.dot_dimension_numbers<[1], [0], [0], [1], [0, 0, 1, 1], [], []>} : vector<8x8xf32>, vector<8x648xf32>, vector<8x648xf32> -> vector<8x648xf32>
    %30 = arith.addf %25, %29 : vector<8x648xf32>
    %c0_27 = arith.constant 0 : index
    %c36 = arith.constant 36 : index
    %31 = vector.load %arg0[%c0_27, %c36] : memref<8x768xf32, #tpu.memory_space<vmem>>, vector<8x648xf32>
    %c6 = arith.constant 6 : index
    %c0_28 = arith.constant 0 : index
    %c0_29 = arith.constant 0 : index
    %32 = vector.load %arg1[%c6, %c0_28, %c0_29] : memref<9x8x8xf32, #tpu.memory_space<vmem>>, vector<1x8x8xf32>
    %33 = vector.shape_cast %32 : vector<1x8x8xf32> to vector<8x8xf32>
    %cst_30 = arith.constant dense<0.000000e+00> : vector<8x648xf32>
    %34 = tpu.matmul %33, %31, %cst_30 {dimension_numbers = #tpu.dot_dimension_numbers<[1], [0], [0], [1], [0, 0, 1, 1], [], []>} : vector<8x8xf32>, vector<8x648xf32>, vector<8x648xf32> -> vector<8x648xf32>
    %35 = arith.addf %30, %34 : vector<8x648xf32>
    %c0_31 = arith.constant 0 : index
    %c37 = arith.constant 37 : index
    %36 = vector.load %arg0[%c0_31, %c37] : memref<8x768xf32, #tpu.memory_space<vmem>>, vector<8x648xf32>
    %c7 = arith.constant 7 : index
    %c0_32 = arith.constant 0 : index
    %c0_33 = arith.constant 0 : index
    %37 = vector.load %arg1[%c7, %c0_32, %c0_33] : memref<9x8x8xf32, #tpu.memory_space<vmem>>, vector<1x8x8xf32>
    %38 = vector.shape_cast %37 : vector<1x8x8xf32> to vector<8x8xf32>
    %cst_34 = arith.constant dense<0.000000e+00> : vector<8x648xf32>
    %39 = tpu.matmul %38, %36, %cst_34 {dimension_numbers = #tpu.dot_dimension_numbers<[1], [0], [0], [1], [0, 0, 1, 1], [], []>} : vector<8x8xf32>, vector<8x648xf32>, vector<8x648xf32> -> vector<8x648xf32>
    %40 = arith.addf %35, %39 : vector<8x648xf32>
    %c0_35 = arith.constant 0 : index
    %c38 = arith.constant 38 : index
    %41 = vector.load %arg0[%c0_35, %c38] : memref<8x768xf32, #tpu.memory_space<vmem>>, vector<8x648xf32>
    %c8 = arith.constant 8 : index
    %c0_36 = arith.constant 0 : index
    %c0_37 = arith.constant 0 : index
    %42 = vector.load %arg1[%c8, %c0_36, %c0_37] : memref<9x8x8xf32, #tpu.memory_space<vmem>>, vector<1x8x8xf32>
    %43 = vector.shape_cast %42 : vector<1x8x8xf32> to vector<8x8xf32>
    %cst_38 = arith.constant dense<0.000000e+00> : vector<8x648xf32>
    %44 = tpu.matmul %43, %41, %cst_38 {dimension_numbers = #tpu.dot_dimension_numbers<[1], [0], [0], [1], [0, 0, 1, 1], [], []>} : vector<8x8xf32>, vector<8x648xf32>, vector<8x648xf32> -> vector<8x648xf32>
    %45 = arith.addf %40, %44 : vector<8x648xf32>
    %c0_39 = arith.constant 0 : index
    %c0_40 = arith.constant 0 : index
    %46 = vector.load %arg2[%c0_39, %c0_40] : memref<1x648xf32, #tpu.memory_space<vmem>>, vector<1x648xf32>
    %47 = vector.broadcast %46 : vector<1x648xf32> to vector<8x648xf32>
    %48 = arith.mulf %45, %47 : vector<8x648xf32>
    %cst_41 = arith.constant dense<0.000000e+00> : vector<8xf32>
    %49 = vector.multi_reduction <add>, %48, %cst_41 [1] : vector<8x648xf32> to vector<8xf32>
    %50 = vector.shape_cast %49 : vector<8xf32> to vector<8x1xf32>
    %cst_42 = arith.constant 0.001953125 : f32
    %51 = vector.broadcast %cst_42 : f32 to vector<8x1xf32>
    %52 = arith.mulf %50, %51 : vector<8x1xf32>
    %53 = vector.broadcast %52 : vector<8x1xf32> to vector<8x648xf32>
    %54 = arith.subf %45, %53 : vector<8x648xf32>
    %55 = vector.broadcast %46 : vector<1x648xf32> to vector<8x648xf32>
    %56 = arith.mulf %54, %55 : vector<8x648xf32>
    %57 = arith.mulf %56, %56 : vector<8x648xf32>
    %cst_43 = arith.constant dense<0.000000e+00> : vector<8xf32>
    %58 = vector.multi_reduction <add>, %57, %cst_43 [1] : vector<8x648xf32> to vector<8xf32>
    %59 = vector.shape_cast %58 : vector<8xf32> to vector<8x1xf32>
    %cst_44 = arith.constant 0.001953125 : f32
    %60 = vector.broadcast %cst_44 : f32 to vector<8x1xf32>
    %61 = arith.mulf %59, %60 : vector<8x1xf32>
    %c0_45 = arith.constant 0 : index
    %c0_46 = arith.constant 0 : index
    %62 = vector.load %arg3[%c0_45, %c0_46] : memref<8x1xf32, #tpu.memory_space<vmem>>, vector<8x1xf32>
    %cst_47 = arith.constant 9.99999974E-6 : f32
    %63 = vector.broadcast %cst_47 : f32 to vector<8x1xf32>
    %64 = arith.addf %61, %63 : vector<8x1xf32>
    %65 = math.rsqrt %64 : vector<8x1xf32>
    %66 = arith.mulf %62, %65 : vector<8x1xf32>
    %c0_48 = arith.constant 0 : index
    %c0_49 = arith.constant 0 : index
    %67 = vector.load %arg4[%c0_48, %c0_49] : memref<8x1xf32, #tpu.memory_space<vmem>>, vector<8x1xf32>
    %68 = arith.mulf %52, %66 : vector<8x1xf32>
    %69 = arith.subf %67, %68 : vector<8x1xf32>
    %70 = vector.broadcast %66 : vector<8x1xf32> to vector<8x648xf32>
    %71 = arith.mulf %45, %70 : vector<8x648xf32>
    %72 = vector.broadcast %69 : vector<8x1xf32> to vector<8x648xf32>
    %73 = arith.addf %71, %72 : vector<8x648xf32>
    %c0_50 = arith.constant 0 : index
    %c0_51 = arith.constant 0 : index
    %74 = vector.load %arg5[%c0_50, %c0_51] : memref<8x648xf32, #tpu.memory_space<vmem>>, vector<8x648xf32>
    tpu.vector_store %arg5[%c0_50, %c0_51], %73 {strides = array<i32>} : memref<8x648xf32, #tpu.memory_space<vmem>>, vector<8x648xf32>,
    return
  }
}

</mosaic_0001>

<bundles_post_ra>
// kernel: tpu_custom_call.1
= control target key start
LH: loop header
LB: loop body
LE: loop exit
PB: predicated region body
PF: predicated region fallthrough
CT: control target
= control target key end

     0   :  { %s1978_s0 = inlined_call_operand.vmem [shape: f32[8,768], index: 0, kind: input, shape index: {}]   ;;  %s1979_s1 = inlined_call_operand.vmem [shape: f32[9,8,8], index: 1, kind: input, shape index: {}]   ;;  %s1980_s2 = inlined_call_operand.vmem [shape: f32[1,648], index: 2, kind: input, shape index: {}]   ;;  %s1981_s3 = inlined_call_operand.vmem [shape: f32[8,1], index: 3, kind: input, shape index: {}]   ;;  %s1982_s4 = inlined_call_operand.vmem [shape: f32[8,1], index: 4, kind: input, shape index: {}]   ;;  %s1983_s5 = inlined_call_operand.hbm [shape: f32[8,648], index: 5, kind: output, shape index: {}]  }
   0x1   :  { %v1767_v0 = vld [vmem:[%s1978_s0 + $0x20] sm:$0xff]  ;;  %v1772_v1 = vld [vmem:[%s1978_s0 + $0x28] sm:$0xff]  ;;  %v1777_v2 = vld [vmem:[%s1978_s0 + $0x10] sm:$0xff] }
   0x2   :  { %v1590_v3 = vpack.i.bf16 %v1772_v1, %v1767_v0  ;;  %v1784_v4 = vld [vmem:[%s1978_s0 + $0x18] sm:$0xff]  ;;  %v21_v6 = vld [vmem:[%s1978_s0] sm:$0xff]  ;;  %v22_v7 = vld [vmem:[%s1978_s0 + $0x8] sm:$0xff] }
   0x3   :  { %v1580_v5 = vpack.i.bf16 %v1784_v4, %v1777_v2 }
   0x4   :  { %10 = vsyncpa [#allocation3], 0  ;;  %s1724_s30 = smov 127   ;;  %v1600_v8 = vpack.i.bf16 %v22_v7, %v21_v6  ;;  %s1725_s6 = smov 126   ;;  %v1615_v9 = vpack.i.bf16 %v1767_v0, %v1777_v2  ;;  %v1620_v10 = vpack.i.bf16 %v1784_v4, %v1772_v1  ;;  %vm48_vm0 = vcmask 1039360   ;;  %v1508_v17 = vld [vmem:[%s1979_s1 + $0x8] sm:$0xff] }
   0x5   :  { %1591 = vrot.lane.b32.xlu1 %v1590_v3, %s1724_s30  ;;  %1581 = vrot.lane.b32.xlu0 %v1580_v5, %s1724_s30  ;;  %s1726_s7 = smov 110   ;;  %s1727_s0 = smov 109   ;;  %vm60_vm1 = vcmask 64512   ;;  %vm321_vm2 = vcmask 1031168   ;;  %v27_v32 = vld [vmem:[%s1979_s1] sm:$0xff]  ;;  %vm476_vm3 = vcmask 900096  }
   0x6   :  { %1601 = vrot.lane.b32.xlu2 %v1600_v8, %s1725_s6  ;;  %s1728_s8 = smov 108   ;;  %s1729_s9 = smov 92   ;;  %v1521_v51 = vld [vmem:[%s1979_s1 + $0x10] sm:$0xff]  ;;  %vm631_vm4 = vcmask 891904   ;;  %v1528_v62 = vld [vmem:[%s1979_s1 + $0x18] sm:$0xff]  ;;  %vm786_vm5 = vcmask 883712  }
   0x7   :  { %s1730_s10 = smov 91   ;;  %s1731_s11 = smov 90   ;;  %vm941_vm6 = vcmask 752640   ;;  %vm1096_vm7 = vcmask 744448   ;;  %vm1251_vm8 = vcmask 736256  }
   0xd   :  { %1596 = vrot.lane.b32.xlu1 %v1580_v5, %s1725_s6  ;;  %1586 = vrot.lane.b32.xlu0 %v1600_v8, %s1724_s30 }
   0xe   :  { %1606 = vrot.lane.b32.xlu2 %v1590_v3, %s1725_s6 }
  0x15   :  { %1616 = vrot.lane.b32.xlu1 %v1615_v9, %s1726_s7  ;;  %1611 = vrot.lane.b32.xlu0 %v1600_v8, %s1726_s7 }
  0x16   :  { %1621 = vrot.lane.b32.xlu2 %v1620_v10, %s1726_s7 }
  0x1d   :  { %1631 = vrot.lane.b32.xlu1 %v1600_v8, %s1727_s0  ;;  %1626 = vrot.lane.b32.xlu0 %v1580_v5, %s1727_s0 }
  0x1e   :  { %1636 = vrot.lane.b32.xlu2 %v1590_v3, %s1727_s0 }
  0x25   :  { %1646 = vrot.lane.b32.xlu1 %v1615_v9, %s1728_s8  ;;  %1641 = vrot.lane.b32.xlu0 %v1600_v8, %s1728_s8 }
  0x26   :  { %1651 = vrot.lane.b32.xlu2 %v1620_v10, %s1728_s8 }
  0x2d   :  { %1661 = vrot.lane.b32.xlu1 %v1600_v8, %s1729_s9  ;;  %1656 = vrot.lane.b32.xlu0 %v1580_v5, %s1729_s9 }
  0x2e   :  { %1666 = vrot.lane.b32.xlu2 %v1590_v3, %s1729_s9 }
  0x35   :  { %1676 = vrot.lane.b32.xlu1 %v1615_v9, %s1730_s10  ;;  %1671 = vrot.lane.b32.xlu0 %v1600_v8, %s1730_s10 }
  0x36   :  { %1681 = vrot.lane.b32.xlu2 %v1620_v10, %s1730_s10  ;;  %s1499_s10 = sshll.u32 %s1983_s5, 4  ;;  %s1500_s10 = int_to_ptr.hbm [resolvable:$true] %s1499_s10 }
  0x3d   :  { %1691 = vrot.lane.b32.xlu1 %v1600_v8, %s1731_s11  ;;  %1686 = vrot.lane.b32.xlu0 %v1580_v5, %s1731_s11 }
  0x3e   :  { %1247 = vrot.lane.b32.xlu2 %v1767_v0, %s1731_s11 }
  0x45   :  { %1249 = vrot.lane.b32.xlu0 %v1772_v1, %s1731_s11 }
  0x60   :  { %v1602_v11 = vpop.permute.xlu2 %1601 }
  0x61   :  { %v1604_v35 = vunpack.i.h.bf16 %v1602_v11  ;;  %v1603_v36 = vunpack.i.l.bf16 %v1602_v11 }
  0x63   :  { %v322_v42 = vsel %vm321_vm2, %v1603_v36, %v1604_v35 }
  0x68   :  { %v1607_v22 = vpop.permute.xlu2 %1606 }
  0x69   :  { %v1608_v28 = vunpack.i.l.bf16 %v1607_v22  ;;  %v1609_v47 = vunpack.i.h.bf16 %v1607_v22 }
  0x6b   :  { %v326_v50 = vsel %vm321_vm2, %v1608_v28, %v1609_v47 }
  0x70   :  { %v1622_v44 = vpop.permute.xlu2 %1621 }
  0x71   :  { %v1623_v49 = vunpack.i.l.bf16 %v1622_v44  ;;  %v1624_v56 = vunpack.i.h.bf16 %v1622_v44 }
  0x77   :  { %v1592_v12 = vpop.permute.xlu1 %1591  ;;  %v1582_v14 = vpop.permute.xlu0 %1581 }
  0x78   :  { %v1593_v13 = vunpack.i.l.bf16 %v1592_v12  ;;  %v1584_v15 = vunpack.i.h.bf16 %v1582_v14  ;;  %v1583_v16 = vunpack.i.l.bf16 %v1582_v14  ;;  %v1594_v20 = vunpack.i.h.bf16 %v1592_v12  ;;  %v1637_v55 = vpop.permute.xlu2 %1636 }
  0x79   :  { %v1638_v57 = vunpack.i.l.bf16 %v1637_v55 }
  0x7a   :  { %v51_v18 = vsel %vm48_vm0, %v1583_v16, %v1584_v15  ;;  %v52_v19 = vsel %vm48_vm0, %v1584_v15, %v1593_v13  ;;  %v53_v31 = vsel %vm48_vm0, %v1593_v13, %v1594_v20  ;;  %v1639_v13 = vunpack.i.h.bf16 %v1637_v55 }
  0x7b   :  { %119 = vmatpush.msra.mxu2 %v51_v18  ;;  %139 = vmatpush.msra.mxu3 %v52_v19 }
  0x7c   :  { %1511 = vmatmul.msk.f32.vlgmr.msra.gmra.mxu2 %vm60_vm1, %v1508_v17  ;;  %1512 = vmatmul.msk.f32.vlgmr.msra.gmra.mxu3 %vm60_vm1, %v1508_v17 }
  0x7d   :  { %202 = vmatpush.msrb.mxu2 %v21_v6  ;;  %222 = vmatpush.msrb.mxu3 %v22_v7 }
  0x7f   :  { %v1597_v21 = vpop.permute.xlu1 %1596  ;;  %282 = vmatpush.msra.mxu2 %v1767_v0  ;;  %302 = vmatpush.msra.mxu3 %v1772_v1  ;;  %v1587_v23 = vpop.permute.xlu0 %1586 }
  0x80   :  { %v1589_v24 = vunpack.i.h.bf16 %v1587_v23  ;;  %v1588_v25 = vunpack.i.l.bf16 %v1587_v23  ;;  %v1599_v26 = vunpack.i.h.bf16 %v1597_v21  ;;  %v1598_v27 = vunpack.i.l.bf16 %v1597_v21  ;;  %v1652_v10 = vpop.permute.xlu2 %1651 }
  0x81   :  { %v1653_v15 = vunpack.i.l.bf16 %v1652_v10  ;;  %v1654_v22 = vunpack.i.h.bf16 %v1652_v10 }
  0x82   :  { %v49_v29 = vsel %vm48_vm0, %v1588_v25, %v1589_v24  ;;  %v50_v30 = vsel %vm48_vm0, %v1589_v24, %v1583_v16  ;;  %v324_v33 = vsel %vm321_vm2, %v1598_v27, %v1599_v26  ;;  %v325_v34 = vsel %vm321_vm2, %v1599_v26, %v1608_v28  ;;  %v1542_v28 = vld [vmem:[%s1979_s1 + $0x28] sm:$0xff] }
  0x83   :  { %79 = vmatpush.msra.mxu0 %v49_v29  ;;  %99 = vmatpush.msra.mxu1 %v50_v30  ;;  %v323_v43 = vsel %vm321_vm2, %v1604_v35, %v1598_v27  ;;  %v636_v16 = vsel %vm631_vm4, %v1638_v57, %v1639_v13 }
  0x84   :  { %1509 = vmatmul.msk.f32.vlgmr.msra.gmra.mxu0 %vm60_vm1, %v1508_v17  ;;  %1510 = vmatmul.msk.f32.vlgmr.msra.gmra.mxu1 %vm60_vm1, %v1508_v17 }
  0x85   :  { %159 = vmatpush.msrb.mxu0 %v53_v31  ;;  %179 = vmatpush.msrb.mxu1 %v1594_v20 }
  0x86   :  { %1515 = vmatmul.msk.f32.vlgmr.msrb.gmra.mxu2 %vm60_vm1, %v27_v32  ;;  %1516 = vmatmul.msk.f32.vlgmr.msrb.gmra.mxu3 %vm60_vm1, %v27_v32 }
  0x87   :  { %v1617_v37 = vpop.permute.xlu1 %1616  ;;  %242 = vmatpush.msra.mxu0 %v1777_v2  ;;  %262 = vmatpush.msra.mxu1 %v1784_v4  ;;  %v1612_v38 = vpop.permute.xlu0 %1611 }
  0x88   :  { %391 = vmatpush.msrb.mxu2 %v324_v33  ;;  %411 = vmatpush.msrb.mxu3 %v325_v34  ;;  %v1618_v39 = vunpack.i.l.bf16 %v1617_v37  ;;  %v1614_v40 = vunpack.i.h.bf16 %v1612_v38  ;;  %v1613_v41 = vunpack.i.l.bf16 %v1612_v38  ;;  %v1619_v48 = vunpack.i.h.bf16 %v1617_v37  ;;  %v1667_v21 = vpop.permute.xlu2 %1666 }
  0x89   :  { %v1668_v23 = vunpack.i.l.bf16 %v1667_v21 }
  0x8a   :  { %v477_v45 = vsel %vm476_vm3, %v1613_v41, %v1614_v40  ;;  %v478_v46 = vsel %vm476_vm3, %v1614_v40, %v1618_v39  ;;  %v481_v54 = vsel %vm476_vm3, %v1619_v48, %v1623_v49  ;;  %v479_v60 = vsel %vm476_vm3, %v1618_v39, %v1624_v56 }
  0x8b   :  { %v480_v61 = vsel %vm476_vm3, %v1624_v56, %v1619_v48  ;;  %v1556_v56 = vld [vmem:[%s1979_s1 + $0x38] sm:$0xff] }
  0x8c   :  { %1513 = vmatmul.msk.f32.vlgmr.msrb.gmra.mxu0 %vm60_vm1, %v1508_v17  ;;  %1514 = vmatmul.msk.f32.vlgmr.msrb.gmra.mxu1 %vm60_vm1, %v1508_v17  ;;  %v1535_v17 = vld [vmem:[%s1979_s1 + $0x20] sm:$0xff] }
  0x8d   :  { %351 = vmatpush.msrb.mxu0 %v322_v42  ;;  %371 = vmatpush.msrb.mxu1 %v323_v43  ;;  %v1669_v43 = vunpack.i.h.bf16 %v1667_v21 }
  0x8e   :  { %1519 = vmatmul.msk.f32.vlgmr.msra.gmra.mxu2 %vm60_vm1, %v27_v32  ;;  %1520 = vmatmul.msk.f32.vlgmr.msra.gmra.mxu3 %vm60_vm1, %v27_v32 }
  0x8f   :  { %506 = vmatpush.msra.mxu2 %v477_v45  ;;  %526 = vmatpush.msra.mxu3 %v478_v46  ;;  %v1632_v52 = vpop.permute.xlu1 %1631  ;;  %v1627_v53 = vpop.permute.xlu0 %1626  ;;  %v946_v46 = vsel %vm941_vm6, %v1668_v23, %v1669_v43 }
  0x90   :  { %v1629_v58 = vunpack.i.h.bf16 %v1627_v53  ;;  %v1628_v59 = vunpack.i.l.bf16 %v1627_v53  ;;  %v1634_v3 = vunpack.i.h.bf16 %v1632_v52  ;;  %v1633_v4 = vunpack.i.l.bf16 %v1632_v52  ;;  %v1682_v42 = vpop.permute.xlu2 %1681 }
  0x91   :  { %v1683_v45 = vunpack.i.l.bf16 %v1682_v42 }
  0x92   :  { %v634_v63 = vsel %vm631_vm4, %v1628_v59, %v1629_v58  ;;  %v635_v0 = vsel %vm631_vm4, %v1629_v58, %v1638_v57  ;;  %v633_v8 = vsel %vm631_vm4, %v1634_v3, %v1628_v59  ;;  %v632_v9 = vsel %vm631_vm4, %v1633_v4, %v1634_v3 }
  0x94   :  { %1517 = vmatmul.msk.f32.vlgmr.msra.gmra.mxu0 %vm60_vm1, %v27_v32  ;;  %1518 = vmatmul.msk.f32.vlgmr.msra.gmra.mxu1 %vm60_vm1, %v27_v32 }
  0x95   :  { %431 = vmatpush.msra.mxu0 %v326_v50  ;;  %451 = vmatpush.msra.mxu1 %v1609_v47  ;;  %v1549_v47 = vld [vmem:[%s1979_s1 + $0x30] sm:$0xff]  ;;  %v1684_v50 = vunpack.i.h.bf16 %v1682_v42 }
  0x96   :  { %1524 = vmatmul.msk.f32.vlgmr.msrb.gmra.mxu2 %vm60_vm1, %v1521_v51  ;;  %1525 = vmatmul.msk.f32.vlgmr.msrb.gmra.mxu3 %vm60_vm1, %v1521_v51 }
  0x97   :  { %586 = vmatpush.msrb.mxu2 %v481_v54  ;;  %606 = vmatpush.msrb.mxu3 %v1623_v49  ;;  %v1647_v1 = vpop.permute.xlu1 %1646  ;;  %v1642_v2 = vpop.permute.xlu0 %1641 }
  0x98   :  { %v1648_v5 = vunpack.i.l.bf16 %v1647_v1  ;;  %v1644_v6 = vunpack.i.h.bf16 %v1642_v2  ;;  %v1643_v7 = vunpack.i.l.bf16 %v1642_v2  ;;  %v1649_v14 = vunpack.i.h.bf16 %v1647_v1  ;;  %v1248_v53 = vpop.permute.xlu2 %1247  ;;  %v1563_v2 = vld [vmem:[%s1979_s1 + $0x40] sm:$0xff] }
  0x9a   :  { %v787_v11 = vsel %vm786_vm5, %v1643_v7, %v1644_v6  ;;  %v788_v12 = vsel %vm786_vm5, %v1644_v6, %v1648_v5  ;;  %v791_v20 = vsel %vm786_vm5, %v1649_v14, %v1653_v15  ;;  %v789_v26 = vsel %vm786_vm5, %v1648_v5, %v1654_v22 }
  0x9b   :  { %v790_v27 = vsel %vm786_vm5, %v1654_v22, %v1649_v14 }
  0x9c   :  { %1522 = vmatmul.msk.f32.vlgmr.msrb.gmra.mxu0 %vm60_vm1, %v1521_v51  ;;  %1523 = vmatmul.msk.f32.vlgmr.msrb.gmra.mxu1 %vm60_vm1, %v1521_v51 }
  0x9d   :  { %546 = vmatpush.msrb.mxu0 %v479_v60  ;;  %566 = vmatpush.msrb.mxu1 %v480_v61 }
  0x9e   :  { %1529 = vmatmul.msk.f32.vlgmr.msra.gmra.mxu2 %vm60_vm1, %v1528_v62  ;;  %1530 = vmatmul.msk.f32.vlgmr.msra.gmra.mxu3 %vm60_vm1, %v1528_v62 }
  0x9f   :  { %701 = vmatpush.msra.mxu2 %v634_v63  ;;  %721 = vmatpush.msra.mxu3 %v635_v0  ;;  %v1662_v18 = vpop.permute.xlu1 %1661  ;;  %v1657_v19 = vpop.permute.xlu0 %1656 }
  0xa0   :  { %v1659_v24 = vunpack.i.h.bf16 %v1657_v19  ;;  %v1658_v25 = vunpack.i.l.bf16 %v1657_v19  ;;  %v1664_v33 = vunpack.i.h.bf16 %v1662_v18  ;;  %v1663_v34 = vunpack.i.l.bf16 %v1662_v18 }
  0xa2   :  { %v944_v29 = vsel %vm941_vm6, %v1658_v25, %v1659_v24  ;;  %v945_v30 = vsel %vm941_vm6, %v1659_v24, %v1668_v23  ;;  %v943_v38 = vsel %vm941_vm6, %v1664_v33, %v1658_v25  ;;  %v942_v39 = vsel %vm941_vm6, %v1663_v34, %v1664_v33 }
  0xa4   :  { %1526 = vmatmul.msk.f32.vlgmr.msra.gmra.mxu0 %vm60_vm1, %v1521_v51  ;;  %1527 = vmatmul.msk.f32.vlgmr.msra.gmra.mxu1 %vm60_vm1, %v1521_v51 }
  0xa5   :  { %681 = vmatpush.msra.mxu1 %v633_v8  ;;  %661 = vmatpush.msra.mxu0 %v632_v9 }
  0xa6   :  { %1533 = vmatmul.msk.f32.vlgmr.msrb.gmra.mxu2 %vm60_vm1, %v1528_v62  ;;  %1534 = vmatmul.msk.f32.vlgmr.msrb.gmra.mxu3 %vm60_vm1, %v1528_v62 }
  0xa7   :  { %816 = vmatpush.msrb.mxu2 %v787_v11  ;;  %836 = vmatpush.msrb.mxu3 %v788_v12  ;;  %v1677_v31 = vpop.permute.xlu1 %1676  ;;  %v1672_v32 = vpop.permute.xlu0 %1671 }
  0xa8   :  { %v1678_v35 = vunpack.i.l.bf16 %v1677_v31  ;;  %v1674_v36 = vunpack.i.h.bf16 %v1672_v32  ;;  %v1673_v37 = vunpack.i.l.bf16 %v1672_v32  ;;  %v1679_v44 = vunpack.i.h.bf16 %v1677_v31 }
  0xaa   :  { %v1097_v40 = vsel %vm1096_vm7, %v1673_v37, %v1674_v36  ;;  %v1098_v41 = vsel %vm1096_vm7, %v1674_v36, %v1678_v35  ;;  %v1101_v48 = vsel %vm1096_vm7, %v1679_v44, %v1683_v45  ;;  %v1099_v54 = vsel %vm1096_vm7, %v1678_v35, %v1684_v50 }
  0xab   :  { %v1100_v55 = vsel %vm1096_vm7, %v1684_v50, %v1679_v44 }
  0xac   :  { %1531 = vmatmul.msk.f32.vlgmr.msrb.gmra.mxu0 %vm60_vm1, %v1528_v62  ;;  %1532 = vmatmul.msk.f32.vlgmr.msrb.gmra.mxu1 %vm60_vm1, %v1528_v62 }
  0xad   :  { %741 = vmatpush.msrb.mxu0 %v636_v16  ;;  %761 = vmatpush.msrb.mxu1 %v1639_v13 }
  0xae   :  { %1538 = vmatmul.msk.f32.vlgmr.msra.gmra.mxu2 %vm60_vm1, %v1535_v17  ;;  %1539 = vmatmul.msk.f32.vlgmr.msra.gmra.mxu3 %vm60_vm1, %v1535_v17 }
  0xaf   :  { %896 = vmatpush.msra.mxu2 %v791_v20  ;;  %916 = vmatpush.msra.mxu3 %v1653_v15  ;;  %v1687_v49 = vpop.permute.xlu0 %1686  ;;  %v1692_v57 = vpop.permute.xlu1 %1691 }
  0xb0   :  { %v1689_v51 = vunpack.i.h.bf16 %v1687_v49  ;;  %v1688_v52 = vunpack.i.l.bf16 %v1687_v49  ;;  %v1694_v60 = vunpack.i.h.bf16 %v1692_v57  ;;  %v1693_v61 = vunpack.i.l.bf16 %v1692_v57 }
  0xb2   :  { %v1255_v58 = vsel %vm1251_vm8, %v1689_v51, %v1248_v53  ;;  %v1254_v59 = vsel %vm1251_vm8, %v1688_v52, %v1689_v51  ;;  %v1253_v62 = vsel %vm1251_vm8, %v1694_v60, %v1688_v52  ;;  %v1252_v63 = vsel %vm1251_vm8, %v1693_v61, %v1694_v60 }
  0xb4   :  { %1536 = vmatmul.msk.f32.vlgmr.msra.gmra.mxu0 %vm60_vm1, %v1535_v17  ;;  %1537 = vmatmul.msk.f32.vlgmr.msra.gmra.mxu1 %vm60_vm1, %v1535_v17 }
  0xb5   :  { %856 = vmatpush.msra.mxu0 %v789_v26  ;;  %876 = vmatpush.msra.mxu1 %v790_v27 }
  0xb6   :  { %1543 = vmatmul.msk.f32.vlgmr.msrb.gmra.mxu2 %vm60_vm1, %v1542_v28  ;;  %1544 = vmatmul.msk.f32.vlgmr.msrb.gmra.mxu3 %vm60_vm1, %v1542_v28 }
  0xb7   :  { %1011 = vmatpush.msrb.mxu2 %v944_v29  ;;  %1031 = vmatpush.msrb.mxu3 %v945_v30  ;;  %v1250_v0 = vpop.permute.xlu0 %1249 }
  0xb8   :  { %v1256_v1 = vsel %vm1251_vm8, %v1248_v53, %v1250_v0 }
  0xbc   :  { %1540 = vmatmul.msk.f32.vlgmr.msrb.gmra.mxu0 %vm60_vm1, %v1535_v17  ;;  %1541 = vmatmul.msk.f32.vlgmr.msrb.gmra.mxu1 %vm60_vm1, %v1535_v17 }
  0xbd   :  { %991 = vmatpush.msrb.mxu1 %v943_v38  ;;  %971 = vmatpush.msrb.mxu0 %v942_v39 }
  0xbe   :  { %1547 = vmatmul.msk.f32.vlgmr.msra.gmra.mxu2 %vm60_vm1, %v1542_v28  ;;  %1548 = vmatmul.msk.f32.vlgmr.msra.gmra.mxu3 %vm60_vm1, %v1542_v28 }
  0xbf   :  { %1126 = vmatpush.msra.mxu2 %v1097_v40  ;;  %1146 = vmatpush.msra.mxu3 %v1098_v41 }
  0xc4   :  { %1545 = vmatmul.msk.f32.vlgmr.msra.gmra.mxu0 %vm60_vm1, %v1542_v28  ;;  %1546 = vmatmul.msk.f32.vlgmr.msra.gmra.mxu1 %vm60_vm1, %v1542_v28 }
  0xc5   :  { %1051 = vmatpush.msra.mxu0 %v946_v46  ;;  %1071 = vmatpush.msra.mxu1 %v1669_v43 }
  0xc6   :  { %1552 = vmatmul.msk.f32.vlgmr.msrb.gmra.mxu2 %vm60_vm1, %v1549_v47  ;;  %1553 = vmatmul.msk.f32.vlgmr.msrb.gmra.mxu3 %vm60_vm1, %v1549_v47 }
  0xc7   :  { %1206 = vmatpush.msrb.mxu2 %v1101_v48  ;;  %1226 = vmatpush.msrb.mxu3 %v1683_v45 }
  0xcc   :  { %1550 = vmatmul.msk.f32.vlgmr.msrb.gmra.mxu0 %vm60_vm1, %v1549_v47  ;;  %1551 = vmatmul.msk.f32.vlgmr.msrb.gmra.mxu1 %vm60_vm1, %v1549_v47 }
  0xcd   :  { %1166 = vmatpush.msrb.mxu0 %v1099_v54  ;;  %1186 = vmatpush.msrb.mxu1 %v1100_v55 }
  0xce   :  { %1557 = vmatmul.msk.f32.vlgmr.msra.gmra.mxu2 %vm60_vm1, %v1556_v56  ;;  %1558 = vmatmul.msk.f32.vlgmr.msra.gmra.mxu3 %vm60_vm1, %v1556_v56 }
  0xcf   :  { %1321 = vmatpush.msra.mxu2 %v1254_v59  ;;  %1341 = vmatpush.msra.mxu3 %v1255_v58 }
  0xd4   :  { %1554 = vmatmul.msk.f32.vlgmr.msra.gmra.mxu0 %vm60_vm1, %v1549_v47  ;;  %1555 = vmatmul.msk.f32.vlgmr.msra.gmra.mxu1 %vm60_vm1, %v1549_v47 }
  0xd5   :  { %1301 = vmatpush.msra.mxu1 %v1253_v62  ;;  %1281 = vmatpush.msra.mxu0 %v1252_v63 }
  0xd6   :  { %1561 = vmatmul.msk.f32.vlgmr.msrb.gmra.mxu2 %vm60_vm1, %v1556_v56  ;;  %1562 = vmatmul.msk.f32.vlgmr.msrb.gmra.mxu3 %vm60_vm1, %v1556_v56 }
  0xdc   :  { %1559 = vmatmul.msk.f32.vlgmr.msrb.gmra.mxu0 %vm60_vm1, %v1556_v56  ;;  %1560 = vmatmul.msk.f32.vlgmr.msrb.gmra.mxu1 %vm60_vm1, %v1556_v56 }
  0xdd   :  { %1361 = vmatpush.msrb.mxu0 %v1256_v1  ;;  %1381 = vmatpush.msrb.mxu1 %v1250_v0 }
  0xde   :  { %1566 = vmatmul.msk.f32.vlgmr.msra.gmra.mxu2 %vm60_vm1, %v1563_v2  ;;  %1567 = vmatmul.msk.f32.vlgmr.msra.gmra.mxu3 %vm60_vm1, %v1563_v2 }
  0xe4   :  { %1564 = vmatmul.msk.f32.vlgmr.msra.gmra.mxu0 %vm60_vm1, %v1563_v2  ;;  %1565 = vmatmul.msk.f32.vlgmr.msra.gmra.mxu1 %vm60_vm1, %v1563_v2 }
  0xec   :  { %1568 = vmatmul.msk.f32.vlgmr.msrb.gmra.mxu0 %vm60_vm1, %v1563_v2  ;;  %1569 = vmatmul.msk.f32.vlgmr.msrb.gmra.mxu1 %vm60_vm1, %v1563_v2 }
  0xff   :  { %v121_v3 = vpop.f32.mrf.mxu2  ;;  %v141_v4 = vpop.f32.mrf.mxu3 }
 0x101   :  { %v81_v5 = vpop.f32.mrf.mxu0  ;;  %v101_v6 = vpop.f32.mrf.mxu1 }
 0x109   :  { %v204_v7 = vpop.f32.mrf.mxu2  ;;  %v224_v8 = vpop.f32.mrf.mxu3 }
 0x10a   :  { %v205_v9 = vadd.f32 %v204_v7, %v81_v5  ;;  %v225_v10 = vadd.f32 %v224_v8, %v101_v6  ;;  %v161_v11 = vpop.f32.mrf.mxu0  ;;  %v181_v12 = vpop.f32.mrf.mxu1 }
 0x111   :  { %v284_v13 = vpop.f32.mrf.mxu2  ;;  %v304_v14 = vpop.f32.mrf.mxu3 }
 0x112   :  { %v285_v15 = vadd.f32 %v284_v13, %v161_v11  ;;  %v305_v16 = vadd.f32 %v304_v14, %v181_v12  ;;  %v244_v17 = vpop.f32.mrf.mxu0  ;;  %v264_v18 = vpop.f32.mrf.mxu1  ;;  %v1928_v13 = vld [vmem:[%s1980_s2] sm:$0x3f] }
 0x113   :  { %v245_v19 = vadd.f32 %v244_v17, %v121_v3  ;;  %v265_v20 = vadd.f32 %v264_v18, %v141_v4 }
 0x119   :  { %v393_v21 = vpop.f32.mrf.mxu2  ;;  %v413_v22 = vpop.f32.mrf.mxu3 }
 0x11a   :  { %v353_v23 = vpop.f32.mrf.mxu0  ;;  %v373_v24 = vpop.f32.mrf.mxu1  ;;  %v458_v53 = vadd.f32 %v393_v21, %v245_v19  ;;  %v459_v61 = vadd.f32 %v413_v22, %v265_v20  ;;  %v1394_v19 = vperm.slane %v1928_v13, 0 }
 0x11b   :  { %v456_v54 = vadd.f32 %v353_v23, %v205_v9  ;;  %v457_v55 = vadd.f32 %v373_v24, %v225_v10 }
 0x121   :  { %v508_v25 = vpop.f32.mrf.mxu2  ;;  %v528_v26 = vpop.f32.mrf.mxu3 }
 0x122   :  { %v433_v27 = vpop.f32.mrf.mxu0  ;;  %v453_v28 = vpop.f32.mrf.mxu1  ;;  %v611_v56 = vadd.f32 %v508_v25, %v456_v54  ;;  %v612_v57 = vadd.f32 %v528_v26, %v457_v55  ;;  %v1396_v25 = vperm.slane %v1928_v13, 2 }
 0x123   :  { %v460_v7 = vadd.f32 %v433_v27, %v285_v15  ;;  %v461_v8 = vadd.f32 %v453_v28, %v305_v16  ;;  %v1395_v15 = vperm.slane %v1928_v13, 1 }
 0x129   :  { %v588_v29 = vpop.f32.mrf.mxu2  ;;  %v608_v30 = vpop.f32.mrf.mxu3 }
 0x12a   :  { %v548_v31 = vpop.f32.mrf.mxu0  ;;  %v568_v32 = vpop.f32.mrf.mxu1  ;;  %v615_v14 = vadd.f32 %v588_v29, %v460_v7  ;;  %v616_v17 = vadd.f32 %v608_v30, %v461_v8 }
 0x12b   :  { %v613_v58 = vadd.f32 %v548_v31, %v458_v53  ;;  %v614_v3 = vadd.f32 %v568_v32, %v459_v61 }
 0x131   :  { %v703_v33 = vpop.f32.mrf.mxu2  ;;  %v723_v34 = vpop.f32.mrf.mxu3 }
 0x132   :  { %v663_v35 = vpop.f32.mrf.mxu0  ;;  %v683_v36 = vpop.f32.mrf.mxu1  ;;  %v768_v0 = vadd.f32 %v703_v33, %v613_v58  ;;  %v769_v11 = vadd.f32 %v723_v34, %v614_v3 }
 0x133   :  { %v766_v1 = vadd.f32 %v663_v35, %v611_v56  ;;  %v767_v2 = vadd.f32 %v683_v36, %v612_v57 }
 0x139   :  { %v818_v37 = vpop.f32.mrf.mxu2  ;;  %v838_v38 = vpop.f32.mrf.mxu3 }
 0x13a   :  { %v743_v39 = vpop.f32.mrf.mxu0  ;;  %v763_v40 = vpop.f32.mrf.mxu1  ;;  %v921_v4 = vadd.f32 %v818_v37, %v766_v1  ;;  %v922_v5 = vadd.f32 %v838_v38, %v767_v2 }
 0x13b   :  { %v770_v16 = vadd.f32 %v743_v39, %v615_v14  ;;  %v771_v24 = vadd.f32 %v763_v40, %v616_v17  ;;  %v1397_v39 = vperm.slane %v1928_v13, 3 }
 0x141   :  { %v898_v41 = vpop.f32.mrf.mxu2  ;;  %v918_v42 = vpop.f32.mrf.mxu3 }
 0x142   :  { %v858_v43 = vpop.f32.mrf.mxu0  ;;  %v878_v44 = vpop.f32.mrf.mxu1  ;;  %v925_v32 = vadd.f32 %v898_v41, %v770_v16  ;;  %v926_v34 = vadd.f32 %v918_v42, %v771_v24  ;;  %v1399_v42 = vperm.slane %v1928_v13, 5 }
 0x143   :  { %v923_v6 = vadd.f32 %v858_v43, %v768_v0  ;;  %v924_v18 = vadd.f32 %v878_v44, %v769_v11 }
 0x149   :  { %v1013_v45 = vpop.f32.mrf.mxu2  ;;  %v1033_v46 = vpop.f32.mrf.mxu3 }
 0x14a   :  { %v973_v47 = vpop.f32.mrf.mxu0  ;;  %v993_v48 = vpop.f32.mrf.mxu1  ;;  %v1078_v9 = vadd.f32 %v1013_v45, %v923_v6  ;;  %v1079_v28 = vadd.f32 %v1033_v46, %v924_v18  ;;  %v1398_v46 = vperm.slane %v1928_v13, 4 }
 0x14b   :  { %v1076_v10 = vadd.f32 %v973_v47, %v921_v4  ;;  %v1077_v12 = vadd.f32 %v993_v48, %v922_v5 }
 0x151   :  { %v1128_v49 = vpop.f32.mrf.mxu2  ;;  %v1148_v50 = vpop.f32.mrf.mxu3 }
 0x152   :  { %v1053_v51 = vpop.f32.mrf.mxu0  ;;  %v1073_v52 = vpop.f32.mrf.mxu1  ;;  %v1231_v20 = vadd.f32 %v1128_v49, %v1076_v10  ;;  %v1232_v21 = vadd.f32 %v1148_v50, %v1077_v12 }
 0x153   :  { %v1080_v38 = vadd.f32 %v1053_v51, %v925_v32  ;;  %v1081_v40 = vadd.f32 %v1073_v52, %v926_v34  ;;  %v1448_v34 = vld [vmem:[%s1981_s3] sm:$0xff]  ;;  %s1733_s3 = smov [#allocation2]  }
 0x159   :  { %v1208_v59 = vpop.f32.mrf.mxu2  ;;  %v1228_v60 = vpop.f32.mrf.mxu3 }
 0x15a   :  { %v1168_v62 = vpop.f32.mrf.mxu0  ;;  %v1188_v63 = vpop.f32.mrf.mxu1  ;;  %v1235_v47 = vadd.f32 %v1208_v59, %v1080_v38  ;;  %v1236_v41 = vadd.f32 %v1228_v60, %v1081_v40 }
 0x15b   :  { %v1233_v22 = vadd.f32 %v1168_v62, %v1078_v9  ;;  %v1234_v35 = vadd.f32 %v1188_v63, %v1079_v28 }
 0x161   :  { %v1323_v23 = vpop.f32.mrf.mxu2  ;;  %v1343_v33 = vpop.f32.mrf.mxu3 }
 0x162   :  { %v1283_v26 = vpop.f32.mrf.mxu0  ;;  %v1303_v27 = vpop.f32.mrf.mxu1  ;;  %v1933_v31 = vadd.f32 %v1323_v23, %v1233_v22  ;;  %v1943_v44 = vadd.f32 %v1343_v33, %v1234_v35 }
 0x163   :  { %v1935_v29 = vadd.f32 %v1283_v26, %v1231_v20  ;;  %v1937_v30 = vadd.f32 %v1303_v27, %v1232_v21 }
 0x164   :  { %v1408_v43 = vmul.f32 %v1396_v25, %v1933_v31  ;;  %v1409_v53 = vmul.f32 %v1397_v39, %v1943_v44 }
 0x165   :  { %v1406_v36 = vmul.f32 %v1394_v19, %v1935_v29  ;;  %v1407_v37 = vmul.f32 %v1395_v15, %v1937_v30 }
 0x167   :  { %v1412_v45 = vadd.f32 %v1407_v37, %v1406_v36 }
 0x169   :  { %v1413_v48 = vadd.f32 %v1412_v45, %v1408_v43 }
 0x16a   :  { %v1363_v49 = vpop.f32.mrf.mxu0  ;;  %v1383_v50 = vpop.f32.mrf.mxu1 }
 0x16b   :  { %v1948_v51 = vadd.f32 %v1363_v49, %v1235_v47  ;;  %v1950_v54 = vadd.f32 %v1383_v50, %v1236_v41  ;;  %v1414_v56 = vadd.f32 %v1413_v48, %v1409_v53 }
 0x16d   :  { %v1410_v52 = vmul.f32 %v1398_v46, %v1948_v51  ;;  %v1411_v55 = vmul.f32 %v1399_v42, %v1950_v54 }
 0x16f   :  { %v1415_v57 = vadd.f32 %v1414_v56, %v1410_v52  ;;  %v1416_v58 = vsel %vm60_vm1, %v1411_v55, 0.0 }
 0x171   :  { %v1417_v59 = vadd.f32 %v1416_v58, %v1415_v57 }
 0x173   :  { %1418 = vadd.xlane.f32.xlu1 %v1417_v59 }
 0x1e6   :  { %v1419_v60 = vpop.xlane.xlu1 %1418 }
 0x1e7   :  { %v1420_v61 = vmul.f32 0.001953125, %v1419_v60 }
 0x1e9   :  { %v1421_v62 = vsub.f32 %v1935_v29, %v1420_v61  ;;  %v1422_v63 = vsub.f32 %v1937_v30, %v1420_v61  ;;  %v1423_v0 = vsub.f32 %v1933_v31, %v1420_v61  ;;  %v1424_v1 = vsub.f32 %v1943_v44, %v1420_v61 }
 0x1ea   :  { %v1426_v2 = vsub.f32 %v1950_v54, %v1420_v61  ;;  %v1425_v3 = vsub.f32 %v1948_v51, %v1420_v61 }
 0x1eb   :  { %v1427_v4 = vmul.f32 %v1421_v62, %v1394_v19  ;;  %v1428_v5 = vmul.f32 %v1422_v63, %v1395_v15  ;;  %v1429_v6 = vmul.f32 %v1423_v0, %v1396_v25  ;;  %v1430_v7 = vmul.f32 %v1424_v1, %v1397_v39  ;;  %v1461_v39 = vld [vmem:[%s1982_s4] sm:$0xff]  ;;  %s1497_s4 = sshll.u32 %s1733_s3, 4  ;;  %s1498_s4 = int_to_ptr.vmem [resolvable:$true] %s1497_s4 }
 0x1ec   :  { %v1432_v9 = vmul.f32 %v1426_v2, %v1399_v42  ;;  %v1431_v10 = vmul.f32 %v1425_v3, %v1398_v46  ;;  %v1732_v19 = vmov 0  }
 0x1ed   :  { %v1433_v8 = vmul.f32 %v1427_v4, %v1427_v4  ;;  %v1434_v11 = vmul.f32 %v1428_v5, %v1428_v5  ;;  %v1435_v12 = vmul.f32 %v1429_v6, %v1429_v6  ;;  %v1436_v14 = vmul.f32 %v1430_v7, %v1430_v7  ;;  %1695 = vset.pattern.permute.xlu0 %v1732_v19 }
 0x1ee   :  { %v1438_v18 = vmul.f32 %v1432_v9, %v1432_v9  ;;  %v1437_v20 = vmul.f32 %v1431_v10, %v1431_v10 }
 0x1ef   :  { %v1439_v13 = vadd.f32 %v1434_v11, %v1433_v8 }
 0x1f0   :  { %v1443_v23 = vsel %vm60_vm1, %v1438_v18, 0.0 }
 0x1f1   :  { %v1440_v17 = vadd.f32 %v1439_v13, %v1435_v12 }
 0x1f3   :  { %v1441_v21 = vadd.f32 %v1440_v17, %v1436_v14 }
 0x1f5   :  { %v1442_v22 = vadd.f32 %v1441_v21, %v1437_v20 }
 0x1f7   :  { %v1444_v16 = vadd.f32 %v1443_v23, %v1442_v22 }
 0x1f9   :  { %1445 = vadd.xlane.f32.xlu2 %v1444_v16 }
 0x26c   :  { %v1446_v15 = vpop.xlane.xlu2 %1445 }
 0x26d   :  { %v1447_v24 = vmul.f32 0.001953125, %v1446_v15 }
 0x26f   :  { %v1449_v25 = vadd.f32 1e-05, %v1447_v24 }
 0x271   :  { %1696 = vrsqrt.f32 %v1449_v25  ;;  %vm1456_vm10 = vweird.f32 %v1449_v25 }
 0x277   :  { %v1697_v26 = vpop.eup %1696 }
 0x278   :  { %v1451_v27 = vmul.f32 %v1697_v26, %v1449_v25  ;;  %vm1457_vm9 = vweird.f32 %v1697_v26 }
 0x279   :  { %vm1458_vm11 = vmor %vm1456_vm10, %vm1457_vm9 }
 0x27a   :  { %v1452_v28 = vmul.f32 %v1697_v26, %v1451_v27 }
 0x27c   :  { %v1453_v32 = vmul.f32 0.5, %v1452_v28 }
 0x27e   :  { %v1454_v33 = vsub.f32 1.5, %v1453_v32 }
 0x280   :  { %v1455_v35 = vmul.f32 %v1697_v26, %v1454_v33 }
 0x282   :  { %v1459_v36 = vsel %vm1458_vm11, %v1697_v26, %v1455_v35 }
 0x283   :  { %v1460_v37 = vmul.f32 %v1459_v36, %v1448_v34 }
 0x285   :  { %1466 = vperm.xlu0 %1695, %v1460_v37   ;;  %v1462_v38 = vmul.f32 %v1460_v37, %v1420_v61 }
 0x287   :  { %v1463_v40 = vsub.f32 %v1461_v39, %v1462_v38 }
 0x28d   :  { %1477 = vperm.xlu0 %1695, %v1463_v40  }
 0x2f7   :  { %v1467_v43 = vpop.permute.xlu0 %1466 }
 0x2f8   :  { %v1469_v45 = vmul.f32 %v1467_v43, %v1935_v29  ;;  %v1470_v46 = vmul.f32 %v1467_v43, %v1937_v30  ;;  %v1471_v47 = vmul.f32 %v1467_v43, %v1933_v31  ;;  %v1472_v41 = vmul.f32 %v1467_v43, %v1943_v44 }
 0x2f9   :  { %v1473_v48 = vmul.f32 %v1467_v43, %v1948_v51  ;;  %v1474_v52 = vmul.f32 %v1467_v43, %v1950_v54 }
 0x2ff   :  { %v1478_v42 = vpop.permute.xlu0 %1477 }
 0x300   :  { %v1480_v49 = vadd.f32 %v1478_v42, %v1469_v45  ;;  %v1481_v50 = vadd.f32 %v1478_v42, %v1470_v46  ;;  %v1482_v53 = vadd.f32 %v1478_v42, %v1471_v47  ;;  %v1483_v55 = vadd.f32 %v1478_v42, %v1472_v41 }
 0x301   :  { %v1484_v56 = vadd.f32 %v1478_v42, %v1473_v48  ;;  %v1485_v31 = vadd.f32 %v1478_v42, %v1474_v52 }
 0x302   :  { %1486 = vst [vmem:[#allocation2] sm:$0xff] %v1480_v49 }
 0x303   :  { %1487 = vst [vmem:[#allocation2 + $0x8] sm:$0xff] %v1481_v50 }
 0x304   :  { %1488 = vst [vmem:[#allocation2 + $0x10] sm:$0xff] %v1482_v53 }
 0x305   :  { %1489 = vst [vmem:[#allocation2 + $0x18] sm:$0xff] %v1483_v55 }
 0x306   :  { %1490 = vst [vmem:[#allocation2 + $0x20] sm:$0xff] %v1484_v56 }
 0x307   :  { %1491 = vst.msk [vmem:[#allocation2 + $0x28] sm:$0xff] %vm60_vm1, %v1485_v31 }
 0x308   :  { %1502 = dma.vmem_to_hbm [thread:$0]  %s1498_s4, 768, %s1500_s10, [#allocation3]  }
 0x309   :  { %1722 = dma.done.wait [#allocation3], 768  }
 0x30a   :  { %1723 = vsyncadd [#allocation3], 4294966528 }
 0x30b   :  { %1507 = vsyncpa [#allocation3], 1 }

</bundles_post_ra>
